<compile_context>
chip_gen: v6e
topology: v6e:2x2x1
jax: 0.10.0
libtpu: 0.0.40
codegen_flags: <defaults>
</compile_context>

<pallas_src>
import jax
import jax.numpy as jnp
from jax import lax
from jax.experimental import pallas as pl
from jax.experimental.pallas import tpu as pltpu


# ----------------------------------------------------------------------------
# Fused kernel: qkv = W_big @ x_w + b_big ; att = sigmoid(q_r^T k_r) ;
#               out_T = gamma * (att @ v_r^T) + x_w^T   (lane-dense (H, C*W))
# ----------------------------------------------------------------------------
def _hh_fused_kernel(gamma_ref, x_ref, w_ref, b_ref, out_ref):
    """Per-batch fused QKV conv + attention + residual.

    gamma_ref : SMEM (1,)          f32
    x_ref     : VMEM (1, C*W, H)   f32   -- x raw-viewed as (C*W, H)
    w_ref     : VMEM (CT*W, C*W)   f32   -- kron([wq; wk; wv], I_W)
    b_ref     : VMEM (CT*W, 1)     f32
    out_ref   : VMEM (1, H, C*W)   f32   -- transposed (lane-dense) output
    """
    x_w = x_ref[0]                                   # (C*W, H)
    cw, h = x_w.shape

    # Single fused "1x1 conv" matmul; rows come out already grouped as
    # (Cq*W | Cq*W | C*W) in the torch .view(B,-1,H) layout.
    qkv = jnp.dot(w_ref[...], x_w,
                  preferred_element_type=jnp.float32) + b_ref[...]
    cqw = (qkv.shape[0] - cw) // 2                   # Cq*W (static int)
    q_r = qkv[:cqw]                                  # (Cq*W, H)
    k_r = qkv[cqw:2 * cqw]                           # (Cq*W, H)
    v_r = qkv[2 * cqw:]                              # (C*W,  H)

    # energy[i, j] = sum_m q_r[m, i] * k_r[m, j]  -> (H, H)
    energy = lax.dot_general(q_r, k_r, (((0,), (0,)), ((), ())),
                             preferred_element_type=jnp.float32)
    att = jax.nn.sigmoid(energy)

    # Lane-dense attention output: out_T[j, i] = sum_k att[j, k] * v_r[i, k]
    out_t = lax.dot_general(att, v_r, (((1,), (1,)), ((), ())),
                            preferred_element_type=jnp.float32)   # (H, C*W)

    # Residual in the same (H, C*W) layout: x_T = I_H @ x_w^T via the MXU
    # (exact in f32, avoids an in-kernel vector relayout/transpose).
    rows = lax.broadcasted_iota(jnp.int32, (h, h), 0)
    cols = lax.broadcasted_iota(jnp.int32, (h, h), 1)
    eye_h = (rows == cols).astype(jnp.float32)
    x_t = lax.dot_general(eye_h, x_w, (((1,), (1,)), ((), ())),
                          preferred_element_type=jnp.float32)     # (H, C*W)

    out_ref[0] = gamma_ref[0] * out_t + x_t


# ----------------------------------------------------------------------------
# Wrapper: weight fusion / kron expansion + raw views + final NCHW transpose
# ----------------------------------------------------------------------------
def hh_module_forward(x, params):
    B, C, H, W = x.shape
    Cq = params["wq"].shape[0]
    CT = 2 * Cq + C

    # Fuse wq/wk/wv and expand with kron(., I_W) so that
    # (W_big @ x.reshape(C*W, H))[c*W + r, i] == conv(x)[c, r*H + i],
    # i.e. the conv output lands directly in the .view(B, -1, H) layout.
    w_f = jnp.concatenate([params["wq"], params["wk"], params["wv"]], axis=0)
    b_f = jnp.concatenate([params["bq"], params["bk"], params["bv"]], axis=0)
    w_big = jnp.kron(w_f, jnp.eye(W, dtype=x.dtype))          # (CT*W, C*W)
    b_big = jnp.repeat(b_f, W).reshape(CT * W, 1)             # (CT*W, 1)

    x_w = x.reshape(B, C * W, H)                              # raw view, free

    out_t = pl.pallas_call(
        _hh_fused_kernel,
        grid=(B,),
        in_specs=[
            pl.BlockSpec(memory_space=pltpu.MemorySpace.SMEM),        # gamma
            pl.BlockSpec((1, C * W, H), lambda b: (b, 0, 0)),         # x_w
            pl.BlockSpec((CT * W, C * W), lambda b: (0, 0)),          # W_big
            pl.BlockSpec((CT * W, 1), lambda b: (0, 0)),              # b_big
        ],
        out_specs=pl.BlockSpec((1, H, C * W), lambda b: (b, 0, 0)),
        out_shape=jax.ShapeDtypeStruct((B, H, C * W), jnp.float32),
        compiler_params=pltpu.CompilerParams(
            dimension_semantics=("parallel",)),
    )(params["gamma"], x_w, w_big, b_big)

    # (B, H, C*W) -> (B, C*W, H) -> (B, C, H, W); the transpose is a cheap XLA
    # op and keeps the kernel-side store full-lane (128) dense.
    return out_t.transpose(0, 2, 1).reshape(B, C, H, W)


# Pure-JAX reference (mirrors the PyTorch forward) for verification.
def hh_module_reference(x, params):
    B, C, H, W = x.shape
    conv = lambda w, b: jnp.einsum("oc,bchw->bohw", w, x) + b[None, :, None, None]
    q = conv(params["wq"], params["bq"])
    k = conv(params["wk"], params["bk"])
    v = conv(params["wv"], params["bv"])
    proj_query = q.reshape(B, -1, H).transpose(0, 2, 1)
    proj_key = k.reshape(B, -1, H)
    energy = jnp.einsum("bij,bjk->bik", proj_query, proj_key)
    attention = jax.nn.sigmoid(energy)
    proj_value = v.reshape(B, -1, H)
    out = jnp.einsum("bij,bkj->bik", proj_value, attention)
    out = out.reshape(B, C, H, W)
    return params["gamma"][0] * out + x


if __name__ == "__main__":
    B, C, H, W = 2, 16, 8, 8          # in_dim must be >= 8 (in_dim // 8 channels)
    Cq = C // 8

    key = jax.random.PRNGKey(0)
    kx, k1, k2, k3, k4, k5, k6 = jax.random.split(key, 7)
    x = jax.random.normal(kx, (B, C, H, W), dtype=jnp.float32)

    params = {
        "wq": 0.1 * jax.random.normal(k1, (Cq, C), dtype=jnp.float32),
        "bq": 0.1 * jax.random.normal(k2, (Cq,), dtype=jnp.float32),
        "wk": 0.1 * jax.random.normal(k3, (Cq, C), dtype=jnp.float32),
        "bk": 0.1 * jax.random.normal(k4, (Cq,), dtype=jnp.float32),
        "wv": 0.1 * jax.random.normal(k5, (C, C), dtype=jnp.float32),
        "bv": 0.1 * jax.random.normal(k6, (C,), dtype=jnp.float32),
        "gamma": jnp.zeros((1,), dtype=jnp.float32),   # nn.Parameter(torch.zeros(1))
    }

    forward = jax.jit(hh_module_forward)

    # Default gamma = 0 (module init): output must equal x exactly-ish.
    out = jax.block_until_ready(forward(x, params))
    ref = hh_module_reference(x, params)
    assert out.shape == (B, C, H, W)
    assert jnp.allclose(out, ref, atol=1e-5, rtol=1e-5)

    # Exercise the attention path with a nonzero gamma.
    params_nz = dict(params, gamma=jnp.full((1,), 0.5, dtype=jnp.float32))
    out_nz = jax.block_until_ready(forward(x, params_nz))
    ref_nz = hh_module_reference(x, params_nz)
    assert jnp.allclose(out_nz, ref_nz, atol=1e-4, rtol=1e-4)

    print("KERNEL_OK")
</pallas_src>

<mosaic_0001>
module attributes {stable_mosaic.version = 11 : i64} {
  func.func @_hh_fused_kernel(%arg0: i32, %arg1: memref<1xf32, #tpu.memory_space<smem>>, %arg2: memref<1x128x8xf32, #tpu.memory_space<vmem>>, %arg3: memref<160x128xf32, #tpu.memory_space<vmem>>, %arg4: memref<160x1xf32, #tpu.memory_space<vmem>>, %arg5: memref<1x8x128xf32, #tpu.memory_space<vmem>>) attributes {dimension_semantics = [#tpu.dimension_semantics<parallel>], iteration_bounds = array<i64: 2>, scalar_prefetch = 0 : i64, scratch_operands = 0 : i64, tpu.core_type = #tpu.core_type<tc>, window_params = [{transform_indices = @transform_0, window_bounds = array<i64: 1>}, {transform_indices = @transform_1, window_bounds = array<i64: 1, 128, 8>}, {pipeline_mode = #tpu.pipeline_mode<synchronous>, transform_indices = @transform_2, window_bounds = array<i64: 160, 128>}, {pipeline_mode = #tpu.pipeline_mode<synchronous>, transform_indices = @transform_3, window_bounds = array<i64: 160, 1>}, {transform_indices = @transform_4, window_bounds = array<i64: 1, 8, 128>}]} {
    %c0 = arith.constant 0 : index
    %c0_0 = arith.constant 0 : index
    %c0_1 = arith.constant 0 : index
    %0 = vector.load %arg2[%c0, %c0_0, %c0_1] : memref<1x128x8xf32, #tpu.memory_space<vmem>>, vector<1x128x8xf32>
    %1 = vector.shape_cast %0 : vector<1x128x8xf32> to vector<128x8xf32>
    %c0_2 = arith.constant 0 : index
    %c0_3 = arith.constant 0 : index
    %2 = vector.load %arg3[%c0_2, %c0_3] : memref<160x128xf32, #tpu.memory_space<vmem>>, vector<160x128xf32>
    %cst = arith.constant dense<0.000000e+00> : vector<160x8xf32>
    %3 = tpu.matmul %2, %1, %cst {dimension_numbers = #tpu.dot_dimension_numbers<[1], [0], [0], [1], [0, 0, 1, 1], [], []>} : vector<160x128xf32>, vector<128x8xf32>, vector<160x8xf32> -> vector<160x8xf32>
    %c0_4 = arith.constant 0 : index
    %c0_5 = arith.constant 0 : index
    %4 = vector.load %arg4[%c0_4, %c0_5] : memref<160x1xf32, #tpu.memory_space<vmem>>, vector<160x1xf32>
    %5 = vector.broadcast %4 : vector<160x1xf32> to vector<160x8xf32>
    %6 = arith.addf %3, %5 : vector<160x8xf32>
    %7 = vector.extract_strided_slice %6 {offsets = [0, 0], sizes = [16, 8], strides = [1, 1]} : vector<160x8xf32> to vector<16x8xf32>
    %8 = vector.extract_strided_slice %6 {offsets = [16, 0], sizes = [16, 8], strides = [1, 1]} : vector<160x8xf32> to vector<16x8xf32>
    %9 = vector.extract_strided_slice %6 {offsets = [32, 0], sizes = [128, 8], strides = [1, 1]} : vector<160x8xf32> to vector<128x8xf32>
    %cst_6 = arith.constant dense<0.000000e+00> : vector<8x8xf32>
    %10 = tpu.matmul %7, %8, %cst_6 {dimension_numbers = #tpu.dot_dimension_numbers<[0], [0], [1], [1], [0, 1, 1, 1], [], []>} : vector<16x8xf32>, vector<16x8xf32>, vector<8x8xf32> -> vector<8x8xf32>
    %11 = arith.negf %10 : vector<8x8xf32>
    %12 = math.exp %11 : vector<8x8xf32>
    %cst_7 = arith.constant 1.000000e+00 : f32
    %13 = vector.broadcast %cst_7 : f32 to vector<8x8xf32>
    %14 = arith.addf %13, %12 : vector<8x8xf32>
    %15 = arith.divf %13, %14 : vector<8x8xf32>
    %cst_8 = arith.constant dense<0.000000e+00> : vector<8x128xf32>
    %16 = tpu.matmul %15, %9, %cst_8 {dimension_numbers = #tpu.dot_dimension_numbers<[1], [1], [0], [0], [0, 0, 1, 0], [], []>} : vector<8x8xf32>, vector<128x8xf32>, vector<8x128xf32> -> vector<8x128xf32>
    %17 = tpu.iota {dimensions = array<i32: 0>} : vector<8x8xi32>
    %18 = tpu.iota {dimensions = array<i32: 1>} : vector<8x8xi32>
    %19 = arith.cmpi eq, %17, %18 : vector<8x8xi32>
    %20 = arith.extui %19 : vector<8x8xi1> to vector<8x8xi32>
    %21 = arith.sitofp %20 : vector<8x8xi32> to vector<8x8xf32>
    %cst_9 = arith.constant dense<0.000000e+00> : vector<8x128xf32>
    %22 = tpu.matmul %21, %1, %cst_9 {dimension_numbers = #tpu.dot_dimension_numbers<[1], [1], [0], [0], [0, 0, 1, 0], [], []>} : vector<8x8xf32>, vector<128x8xf32>, vector<8x128xf32> -> vector<8x128xf32>
    %c0_10 = arith.constant 0 : index
    %23 = memref.load %arg1[%c0_10] : memref<1xf32, #tpu.memory_space<smem>>
    %24 = vector.broadcast %23 : f32 to vector<8x128xf32>
    %25 = arith.mulf %24, %16 : vector<8x128xf32>
    %26 = arith.addf %25, %22 : vector<8x128xf32>
    %c0_11 = arith.constant 0 : index
    %c0_12 = arith.constant 0 : index
    %c0_13 = arith.constant 0 : index
    %27 = vector.load %arg5[%c0_11, %c0_12, %c0_13] : memref<1x8x128xf32, #tpu.memory_space<vmem>>, vector<1x8x128xf32>
    %28 = vector.shape_cast %27 : vector<1x8x128xf32> to vector<8x128xf32>
    %29 = vector.shape_cast %26 : vector<8x128xf32> to vector<1x8x128xf32>
    tpu.vector_store %arg5[%c0_11, %c0_12, %c0_13], %29 {strides = array<i32>} : memref<1x8x128xf32, #tpu.memory_space<vmem>>, vector<1x8x128xf32>,
    return
  }
  func.func @transform_0(%arg0: i32) -> i32 {
    %c0_i32 = arith.constant 0 : i32
    %c0_i32_0 = arith.constant 0 : i32
    return %c0_i32 : i32
  }
  func.func @transform_1(%arg0: i32) -> (i32, i32, i32) {
    %c0_i32 = arith.constant 0 : i32
    %c0_i32_0 = arith.constant 0 : i32
    %c0_i32_1 = arith.constant 0 : i32
    return %arg0, %c0_i32, %c0_i32_0 : i32, i32, i32
  }
  func.func @transform_2(%arg0: i32) -> (i32, i32) {
    %c0_i32 = arith.constant 0 : i32
    %c0_i32_0 = arith.constant 0 : i32
    %c0_i32_1 = arith.constant 0 : i32
    return %c0_i32, %c0_i32_0 : i32, i32
  }
  func.func @transform_3(%arg0: i32) -> (i32, i32) {
    %c0_i32 = arith.constant 0 : i32
    %c0_i32_0 = arith.constant 0 : i32
    %c0_i32_1 = arith.constant 0 : i32
    return %c0_i32, %c0_i32_0 : i32, i32
  }
  func.func @transform_4(%arg0: i32) -> (i32, i32, i32) {
    %c0_i32 = arith.constant 0 : i32
    %c0_i32_0 = arith.constant 0 : i32
    %c0_i32_1 = arith.constant 0 : i32
    return %arg0, %c0_i32, %c0_i32_0 : i32, i32, i32
  }
}

</mosaic_0001>

<bundles_post_ra>
// kernel: hh_module_forward.1
= control target key start
LH: loop header
LB: loop body
LE: loop exit
PB: predicated region body
PF: predicated region fallthrough
CT: control target
= control target key end

     0   :  { %s1254_s17 = smov 0   ;;  %s1580_s0 = inlined_call_operand.<no memory space> [shape: f32[1], index: 0, kind: input, shape index: {}]   ;;  %s1581_s1 = inlined_call_operand.vmem [shape: f32[2,128,8], index: 1, kind: input, shape index: {}]   ;;  %s1582_s2 = inlined_call_operand.vmem [shape: f32[160,128], index: 2, kind: input, shape index: {}]   ;;  %s1583_s3 = inlined_call_operand.vmem [shape: f32[160,1], index: 3, kind: input, shape index: {}]   ;;  %s1584_s4 = inlined_call_operand.vmem [shape: f32[2,8,128], index: 4, kind: output, shape index: {}]  }
   0x1   :  { %9 = sst [smem:[#allocation2]] %s1580_s0 }
   0x2 LB: > { %s938_s18 = sadd.s32 4294967295, %s1221_s17   ;;  %p942_p0 = scmp.ge.s32.totalorder %s1221_s17, 1  ;;  %s1221_s17 = sphi %s1254_s17, %s15_s17  }
   0x3   : > { %p163_p1 = scmp.lt.s32.totalorder %s1221_s17, 3 }
   0x5   : > { %p164_p2 = pnand %p942_p0, %p163_p1 }
   0x6   : > { %p188_p3 = scmp.lt.s32.totalorder (!%p164_p2), %s938_s18, 1 }
   0x7   : > { %167 = sbr.rel (%p164_p2) target bundleno = 793 (0x319), region = 36 }
   0xc   : > { %v213_v0 = vld [vmem:[%s1582_s2] sm:$0xff]  ;;  %v1223_v2 = vmov 0   ;;  %s1586_s18 = smov (!%p188_p3, %s938_s18), 1  ;;  %v234_v3 = vld [vmem:[%s1583_s3 + $0x8] sm:$0xff]  ;;  %v236_v9 = vld [vmem:[%s1583_s3 + $0x18] sm:$0xff]  ;;  %v1224_v56 = vmov 0.0  }
   0xd   : > { %v233_v1 = vld [vmem:[%s1583_s3] sm:$0xff]  ;;  %1091 = vmatprep.mubr.f32.mxu0 %v213_v0  ;;  %1209 = vset.pattern.permute.xlu0 %v1223_v2  ;;  %s985_s24 = sshll.u32 %s1586_s18, 7  ;;  %v235_v11 = vld [vmem:[%s1583_s3 + $0x10] sm:$0xff]  ;;  %v252_v14 = vld [vmem:[%s1583_s3 + $0x98] sm:$0xff]  ;;  %vm1225_vm0 = vmmov 0   ;;  %vm630_vm1 = vcmask 64512  }
   0xe   : > { %255 = vperm.xlu0 %1209, %v233_v1   ;;  %1210 = vset.pattern.permute.xlu1 %v1223_v2  ;;  %s1277_s27 = scalar_lea.vmem %s1581_s1, %s985_s24  ;;  %v251_v17 = vld [vmem:[%s1583_s3 + $0x90] sm:$0xff]  ;;  %v250_v20 = vld [vmem:[%s1583_s3 + $0x88] sm:$0xff]  ;;  %v249_v23 = vld [vmem:[%s1583_s3 + $0x80] sm:$0xff]  ;;  %vm550_vm2 = vcmask 130048   ;;  %s945_s28 = sshll.u32 %s1586_s18, 3 }
   0xf   : > { %v1280_v4 = vld [vmem:[%s1277_s27 + $0x78] sm:$0xff]  ;;  %v1283_v5 = vld [vmem:[%s1277_s27 + $0x70] sm:$0xff]  ;;  %v1288_v6 = vld [vmem:[%s1277_s27 + $0x68] sm:$0xff]  ;;  %270 = vperm.xlu1 %1210, %v236_v9   ;;  %1121 = vmatprep.subr.mxu1 %v1224_v56  ;;  %s196_s5 = scalar_lea.vmem %s1584_s4, %s945_s28 }
  0x10   : > { %1059 = vmatprep.subr.mxu0 %v1280_v4  ;;  %v1293_v7 = vld [vmem:[%s1277_s27 + $0x60] sm:$0xff]  ;;  %v1298_v8 = vld [vmem:[%s1277_s27 + $0x58] sm:$0xff]  ;;  %v1306_v10 = vld [vmem:[%s1277_s27 + $0x50] sm:$0xff]  ;;  %1125 = vmatprep.mubr.msk.f32.mxu1 %vm1225_vm0, %v1224_v56 }
  0x11   : > { %1060 = vmatpush3.msra.mxu0 %v1280_v4  ;;  %v1314_v12 = vld [vmem:[%s1277_s27 + $0x48] sm:$0xff]  ;;  %v1319_v13 = vld [vmem:[%s1277_s27 + $0x40] sm:$0xff]  ;;  %v1327_v15 = vld [vmem:[%s1277_s27 + $0x38] sm:$0xff] }
  0x12   : > { %260 = vperm.xlu0 %1209, %v234_v3   ;;  %1061 = vmatprep.subr.mxu0 %v1283_v5  ;;  %v1332_v16 = vld [vmem:[%s1277_s27 + $0x30] sm:$0xff]  ;;  %v1340_v18 = vld [vmem:[%s1277_s27 + $0x28] sm:$0xff]  ;;  %v1345_v19 = vld [vmem:[%s1277_s27 + $0x20] sm:$0xff] }
  0x13   : > { %1062 = vmatpush3.msra.mxu0 %v1283_v5  ;;  %265 = vperm.xlu1 %1210, %v235_v11   ;;  %v1353_v21 = vld [vmem:[%s1277_s27 + $0x18] sm:$0xff]  ;;  %v1358_v22 = vld [vmem:[%s1277_s27 + $0x10] sm:$0xff]  ;;  %v1366_v24 = vld [vmem:[%s1277_s27 + $0x8] sm:$0xff] }
  0x14   : > { %1063 = vmatprep.subr.mxu0 %v1288_v6  ;;  %v1371_v25 = vld [vmem:[%s1277_s27] sm:$0xff]  ;;  %v248_v26 = vld [vmem:[%s1583_s3 + $0x78] sm:$0xff]  ;;  %v214_v27 = vld [vmem:[%s1582_s2 + $0x8] sm:$0xff]  ;;  %s880_s27 = sld [smem:[#allocation2]] }
  0x15   : > { %1064 = vmatpush3.msra.mxu0 %v1288_v6  ;;  %v215_v28 = vld [vmem:[%s1582_s2 + $0x10] sm:$0xff]  ;;  %v216_v30 = vld [vmem:[%s1582_s2 + $0x18] sm:$0xff]  ;;  %v217_v31 = vld [vmem:[%s1582_s2 + $0x20] sm:$0xff] }
  0x16   : > { %1065 = vmatprep.subr.mxu0 %v1293_v7  ;;  %v247_v29 = vld [vmem:[%s1583_s3 + $0x70] sm:$0xff]  ;;  %v246_v32 = vld [vmem:[%s1583_s3 + $0x68] sm:$0xff]  ;;  %v245_v35 = vld [vmem:[%s1583_s3 + $0x60] sm:$0xff] }
  0x17   : > { %1066 = vmatpush3.msra.mxu0 %v1293_v7  ;;  %350 = vperm.xlu1 %1210, %v252_v14   ;;  %v218_v33 = vld [vmem:[%s1582_s2 + $0x28] sm:$0xff]  ;;  %v219_v34 = vld [vmem:[%s1582_s2 + $0x30] sm:$0xff]  ;;  %v220_v36 = vld [vmem:[%s1582_s2 + $0x38] sm:$0xff] }
  0x18   : > { %1067 = vmatprep.subr.mxu0 %v1298_v8  ;;  %v221_v37 = vld [vmem:[%s1582_s2 + $0x40] sm:$0xff]  ;;  %v244_v38 = vld [vmem:[%s1583_s3 + $0x58] sm:$0xff]  ;;  %v222_v39 = vld [vmem:[%s1582_s2 + $0x48] sm:$0xff] }
  0x19   : > { %1068 = vmatpush3.msra.mxu0 %v1298_v8  ;;  %v223_v40 = vld [vmem:[%s1582_s2 + $0x50] sm:$0xff]  ;;  %v242_v41 = vld [vmem:[%s1583_s3 + $0x48] sm:$0xff]  ;;  %v224_v42 = vld [vmem:[%s1582_s2 + $0x58] sm:$0xff] }
  0x1a   : > { %1069 = vmatprep.subr.mxu0 %v1306_v10  ;;  %v225_v43 = vld [vmem:[%s1582_s2 + $0x60] sm:$0xff]  ;;  %v226_v45 = vld [vmem:[%s1582_s2 + $0x68] sm:$0xff]  ;;  %v227_v46 = vld [vmem:[%s1582_s2 + $0x70] sm:$0xff] }
  0x1b   : > { %1070 = vmatpush3.msra.mxu0 %v1306_v10  ;;  %345 = vperm.xlu1 %1210, %v251_v17   ;;  %v241_v44 = vld [vmem:[%s1583_s3 + $0x40] sm:$0xff]  ;;  %v240_v47 = vld [vmem:[%s1583_s3 + $0x38] sm:$0xff]  ;;  %v239_v50 = vld [vmem:[%s1583_s3 + $0x30] sm:$0xff] }
  0x1c   : > { %1071 = vmatprep.subr.mxu0 %v1314_v12  ;;  %v228_v48 = vld [vmem:[%s1582_s2 + $0x78] sm:$0xff]  ;;  %v229_v49 = vld [vmem:[%s1582_s2 + $0x80] sm:$0xff]  ;;  %v230_v51 = vld [vmem:[%s1582_s2 + $0x88] sm:$0xff] }
  0x1d   : > { %1072 = vmatpush3.msra.mxu0 %v1314_v12  ;;  %v231_v52 = vld [vmem:[%s1582_s2 + $0x90] sm:$0xff]  ;;  %v238_v53 = vld [vmem:[%s1583_s3 + $0x28] sm:$0xff]  ;;  %v232_v54 = vld [vmem:[%s1582_s2 + $0x98] sm:$0xff] }
  0x1e   : > { %1073 = vmatprep.subr.mxu0 %v1319_v13  ;;  %v237_v55 = vld [vmem:[%s1583_s3 + $0x20] sm:$0xff] }
  0x1f   : > { %1074 = vmatpush3.msra.mxu0 %v1319_v13  ;;  %340 = vperm.xlu1 %1210, %v250_v20  }
  0x20   : > { %1075 = vmatprep.subr.mxu0 %v1327_v15 }
  0x21   : > { %1076 = vmatpush3.msra.mxu0 %v1327_v15 }
  0x22   : > { %1077 = vmatprep.subr.mxu0 %v1332_v16 }
  0x23   : > { %1078 = vmatpush3.msra.mxu0 %v1332_v16  ;;  %335 = vperm.xlu1 %1210, %v249_v23  }
  0x24   : > { %1079 = vmatprep.subr.mxu0 %v1340_v18 }
  0x25   : > { %1080 = vmatpush3.msra.mxu0 %v1340_v18 }
  0x26   : > { %1081 = vmatprep.subr.mxu0 %v1345_v19 }
  0x27   : > { %1082 = vmatpush3.msra.mxu0 %v1345_v19  ;;  %330 = vperm.xlu1 %1210, %v248_v26  }
  0x28   : > { %1083 = vmatprep.subr.mxu0 %v1353_v21 }
  0x29   : > { %1084 = vmatpush3.msra.mxu0 %v1353_v21 }
  0x2a   : > { %1085 = vmatprep.subr.mxu0 %v1358_v22 }
  0x2b   : > { %1086 = vmatpush3.msra.mxu0 %v1358_v22  ;;  %325 = vperm.xlu1 %1210, %v247_v29  }
  0x2c   : > { %1087 = vmatprep.subr.mxu0 %v1366_v24 }
  0x2d   : > { %1088 = vmatpush3.msra.mxu0 %v1366_v24 }
  0x2e   : > { %1089 = vmatprep.subr.mxu0 %v1371_v25 }
  0x2f   : > { %1090 = vmatpush3.msra.mxu0 %v1371_v25  ;;  %320 = vperm.xlu1 %1210, %v246_v32  }
  0x30   : > { %1092 = vmatmul.mubr.f32.vlgmr.msra.gmra.mxu0 %v214_v27  ;;  %1163 = vmatprep.subr.mxu0 %v1224_v56 }
  0x31   : > { %1094 = vmatprep.mubr.f32.mxu0 %v215_v28  ;;  %1164 = vmatpush3.xpose.msk.msra.mxu0 %vm630_vm1, %v1280_v4  ;;  %v243_v4 = vld [vmem:[%s1583_s3 + $0x50] sm:$0xff] }
  0x32   : > { %1165 = vmatprep.subr.mxu0 %v1224_v56 }
  0x33   : > { %315 = vperm.xlu1 %1210, %v245_v35  }
  0x34   : > { %1095 = vmatmul.mubr.f32.gmra.mxu0 %v216_v30 }
  0x35   : > { %1097 = vmatprep.mubr.f32.mxu0 %v217_v31  ;;  %1166 = vmatpush3.xpose.msk.msra.mxu0 %vm630_vm1, %v1283_v5 }
  0x36   : > { %1167 = vmatprep.subr.mxu0 %v1224_v56 }
  0x37   : > { %310 = vperm.xlu1 %1210, %v244_v38  }
  0x38   : > { %1098 = vmatmul.mubr.f32.gmra.mxu0 %v218_v33 }
  0x39   : > { %1100 = vmatprep.mubr.f32.mxu0 %v219_v34  ;;  %1168 = vmatpush3.xpose.msk.msra.mxu0 %vm630_vm1, %v1288_v6 }
  0x3a   : > { %1169 = vmatprep.subr.mxu0 %v1224_v56 }
  0x3b   : > { %300 = vperm.xlu1 %1210, %v242_v41  }
  0x3c   : > { %1101 = vmatmul.mubr.f32.gmra.mxu0 %v220_v36 }
  0x3d   : > { %1103 = vmatprep.mubr.f32.mxu0 %v221_v37  ;;  %1170 = vmatpush3.xpose.msk.msra.mxu0 %vm630_vm1, %v1293_v7 }
  0x3e   : > { %1171 = vmatprep.subr.mxu0 %v1224_v56 }
  0x3f   : > { %295 = vperm.xlu1 %1210, %v241_v44  }
  0x40   : > { %1104 = vmatmul.mubr.f32.gmra.mxu0 %v222_v39 }
  0x41   : > { %1106 = vmatprep.mubr.f32.mxu0 %v223_v40  ;;  %1172 = vmatpush3.xpose.msk.msra.mxu0 %vm630_vm1, %v1298_v8 }
  0x42   : > { %1173 = vmatprep.subr.mxu0 %v1224_v56 }
  0x43   : > { %290 = vperm.xlu1 %1210, %v240_v47  }
  0x44   : > { %1107 = vmatmul.mubr.f32.gmra.mxu0 %v224_v42 }
  0x45   : > { %1109 = vmatprep.mubr.f32.mxu0 %v225_v43  ;;  %1174 = vmatpush3.xpose.msk.msra.mxu0 %vm630_vm1, %v1306_v10 }
  0x46   : > { %1175 = vmatprep.subr.mxu0 %v1224_v56 }
  0x47   : > { %285 = vperm.xlu1 %1210, %v239_v50  }
  0x48   : > { %1110 = vmatmul.mubr.f32.gmra.mxu0 %v226_v45 }
  0x49   : > { %1112 = vmatprep.mubr.f32.mxu0 %v227_v46  ;;  %1176 = vmatpush3.xpose.msk.msra.mxu0 %vm630_vm1, %v1314_v12 }
  0x4a   : > { %1177 = vmatprep.subr.mxu0 %v1224_v56 }
  0x4b   : > { %280 = vperm.xlu1 %1210, %v238_v53  }
  0x4c   : > { %1113 = vmatmul.mubr.f32.gmra.mxu0 %v228_v48 }
  0x4d   : > { %1115 = vmatprep.mubr.f32.mxu0 %v229_v49  ;;  %1178 = vmatpush3.xpose.msk.msra.mxu0 %vm630_vm1, %v1319_v13 }
  0x4e   : > { %1179 = vmatprep.subr.mxu0 %v1224_v56 }
  0x4f   : > { %275 = vperm.xlu1 %1210, %v237_v55   ;;  %v752_v55 = vlaneseq }
  0x50   : > { %1116 = vmatmul.mubr.f32.gmra.mxu0 %v230_v51 }
  0x51   : > { %1118 = vmatprep.mubr.f32.mxu0 %v231_v52  ;;  %1180 = vmatpush3.xpose.msk.msra.mxu0 %vm630_vm1, %v1327_v15 }
  0x52   : > { %1181 = vmatprep.subr.mxu0 %v1224_v56 }
  0x54   : > { %1119 = vmatmul.mubr.f32.gmra.mxu0 %v232_v54 }
  0x55   : > { %1195 = vmatprep.mubr.msk.f32.mxu0 %vm1225_vm0, %v1224_v56  ;;  %1182 = vmatpush3.xpose.msk.msra.mxu0 %vm630_vm1, %v1332_v16 }
  0x56   : > { %1183 = vmatprep.subr.mxu0 %v1224_v56 }
  0x59   : > { %1184 = vmatpush3.xpose.msk.msra.mxu0 %vm630_vm1, %v1340_v18 }
  0x5a   : > { %1185 = vmatprep.subr.mxu0 %v1224_v56 }
  0x5d   : > { %1186 = vmatpush3.xpose.msk.msra.mxu0 %vm630_vm1, %v1345_v19 }
  0x5e   : > { %1187 = vmatprep.subr.mxu0 %v1224_v56 }
  0x61   : > { %1188 = vmatpush3.xpose.msk.msra.mxu0 %vm630_vm1, %v1353_v21 }
  0x62   : > { %1189 = vmatprep.subr.mxu0 %v1224_v56 }
  0x65   : > { %1190 = vmatpush3.xpose.msk.msra.mxu0 %vm630_vm1, %v1358_v22 }
  0x66   : > { %1191 = vmatprep.subr.mxu0 %v1224_v56 }
  0x69   : > { %1192 = vmatpush3.xpose.msk.msra.mxu0 %vm630_vm1, %v1366_v24 }
  0x6a   : > { %1193 = vmatprep.subr.mxu0 %v1224_v56 }
  0x6d   : > { %1194 = vmatpush3.xpose.msk.msra.mxu0 %vm630_vm1, %v1371_v25 }
  0x89   : > { %v256_v57 = vpop.permute.xlu0 %255 }
  0x8a   : > { %v271_v59 = vpop.permute.xlu1 %270 }
  0x8d   : > { %v261_v62 = vpop.permute.xlu0 %260 }
  0x8e   : > { %v266_v1 = vpop.permute.xlu1 %265 }
  0x92   : > { %v351_v17 = vpop.permute.xlu1 %350 }
  0x96   : > { %v346_v19 = vpop.permute.xlu1 %345 }
  0x9a   : > { %v341_v22 = vpop.permute.xlu1 %340 }
  0x9e   : > { %v336_v24 = vpop.permute.xlu1 %335 }
  0xa2   : > { %v331_v29 = vpop.permute.xlu1 %330 }
  0xa6   : > { %v326_v31 = vpop.permute.xlu1 %325 }
  0xaa   : > { %v321_v34 = vpop.permute.xlu1 %320 }
  0xae   : > { %v316_v36 = vpop.permute.xlu1 %315 }
  0xb2   : > { %v311_v39 = vpop.permute.xlu1 %310 }
  0xb6   : > { %v301_v41 = vpop.permute.xlu1 %300 }
  0xba   : > { %v296_v42 = vpop.permute.xlu1 %295 }
  0xbe   : > { %v291_v45 = vpop.permute.xlu1 %290 }
  0xc2   : > { %v286_v48 = vpop.permute.xlu1 %285 }
  0xc6   : > { %v281_v50 = vpop.permute.xlu1 %280 }
  0xca   : > { %v276_v53 = vpop.permute.xlu1 %275 }
  0xf0   : > { %v1093_v58 = vpop.f32.mrf.mxu0 }
  0xf1   : > { %v425_v3 = vadd.f32 %v1093_v58, %v261_v62  ;;  %v755_v58 = vand.u32 127, %v752_v55 }
  0xf2   : > { %v419_v60 = vpop.f32.mrf.mxu0 }
  0xf3   : > { %v420_v61 = vadd.f32 %v419_v60, %v256_v57  ;;  %v753_v57 = vshrl.u32 %v752_v55, 7 }
  0xf4   : > { %v1096_v63 = vpop.f32.mrf.mxu0 }
  0xf5   : > { %518 = vxpose.xlu0.b32.start [1/2] (short) (narrow) %v420_v61, 8  ;;  %v435_v0 = vadd.f32 %v1096_v63, %v271_v59  ;;  %vm756_vm3 = vcmp.eq.s32.totalorder %v753_v57, %v755_v58 }
  0xf6   : > { %v429_v2 = vpop.f32.mrf.mxu0  ;;  %v965_v59 = vsel %vm756_vm3, 1.0, %v1224_v56 }
  0xf7   : > { %v430_v9 = vadd.f32 %v429_v2, %v266_v1  ;;  %1122 = vmatpush3.msra.mxu1 %v435_v0  ;;  %1196 = vmatmul.mubr.msk.f32.vlgmr.msra.gmra.mxu0 %vm630_vm1, %v965_v59 }
  0xf8   : > { %1123 = vmatprep.subr.mxu1 %v1224_v56  ;;  %v1525_v5 = vpop.f32.mrf.mxu0 }
  0xf9   : > { %519 = vxpose.xlu0.b32.end [2/2] (short) (narrow) %v425_v3, 8  ;;  %1124 = vmatpush3.msra.mxu1 %v430_v9  ;;  %v445_v52 = vadd.f32 %v1525_v5, %v281_v50  ;;  %v881_v9 = vstv %s880_s27 }
  0xfa   : > { %1128 = vmatprep.subr.mxu1 %v1224_v56  ;;  %v1527_v6 = vpop.f32.mrf.mxu0 }
  0xfb   : > { %v440_v54 = vadd.f32 %v1527_v6, %v276_v53 }
  0xfc   : > { %v1529_v7 = vpop.f32.mrf.mxu0 }
  0xfd   : > { %v455_v49 = vadd.f32 %v1529_v7, %v291_v45 }
  0xfe   : > { %v1531_v8 = vpop.f32.mrf.mxu0 }
  0xff   : > { %v450_v51 = vadd.f32 %v1531_v8, %v286_v48 }
 0x100   : > { %v1105_v10 = vpop.f32.mrf.mxu0 }
 0x101   : > { %v465_v46 = vadd.f32 %v1105_v10, %v301_v41 }
 0x102   : > { %v459_v11 = vpop.f32.mrf.mxu0 }
 0x103   : > { %v460_v47 = vadd.f32 %v459_v11, %v296_v42 }
 0x104   : > { %v1108_v12 = vpop.f32.mrf.mxu0 }
 0x105   : > { %v475_v40 = vadd.f32 %v1108_v12, %v311_v39 }
 0x106   : > { %v469_v13 = vpop.f32.mrf.mxu0 }
 0x108   : > { %v1111_v14 = vpop.f32.mrf.mxu0 }
 0x109   : > { %v485_v37 = vadd.f32 %v1111_v14, %v321_v34 }
 0x10a   : > { %v479_v15 = vpop.f32.mrf.mxu0 }
 0x10b   : > { %v480_v38 = vadd.f32 %v479_v15, %v316_v36 }
 0x10c   : > { %v1114_v16 = vpop.f32.mrf.mxu0 }
 0x10d   : > { %v495_v33 = vadd.f32 %v1114_v16, %v331_v29 }
 0x10e   : > { %v489_v18 = vpop.f32.mrf.mxu0 }
 0x10f   : > { %v490_v35 = vadd.f32 %v489_v18, %v326_v31 }
 0x110   : > { %v1117_v20 = vpop.f32.mrf.mxu0 }
 0x111   : > { %v505_v30 = vadd.f32 %v1117_v20, %v341_v22 }
 0x112   : > { %v499_v21 = vpop.f32.mrf.mxu0 }
 0x113   : > { %v500_v32 = vadd.f32 %v499_v21, %v336_v24 }
 0x114   : > { %v1120_v23 = vpop.f32.mrf.mxu0 }
 0x115   : > { %v515_v25 = vadd.f32 %v1120_v23, %v351_v17 }
 0x116   : > { %v509_v27 = vpop.f32.mrf.mxu0 }
 0x117   : > { %v510_v28 = vadd.f32 %v509_v27, %v346_v19 }
 0x122   : > { %305 = vperm.xlu0 %1209, %v243_v4  }
 0x171   : > { %v534_v26 = vpop.trf.xlu0 }
 0x172   : > { %1126 = vmatmul.mubr.msk.f32.vlgmr.msra.gmra.mxu1 %vm550_vm2, %v534_v26 }
 0x173   : > { %1129 = vmatpush3.xpose.msk.msra.mxu1 %vm630_vm1, %v515_v25  ;;  %1160 = vmatprep.mubr.msk.f32.mxu1 %vm1225_vm0, %v1224_v56 }
 0x174   : > { %1130 = vmatprep.subr.mxu1 %v1224_v56 }
 0x177   : > { %1131 = vmatpush3.xpose.msk.msra.mxu1 %vm630_vm1, %v510_v28 }
 0x178   : > { %1132 = vmatprep.subr.mxu1 %v1224_v56 }
 0x17b   : > { %1133 = vmatpush3.xpose.msk.msra.mxu1 %vm630_vm1, %v505_v30 }
 0x17c   : > { %1134 = vmatprep.subr.mxu1 %v1224_v56 }
 0x17f   : > { %1135 = vmatpush3.xpose.msk.msra.mxu1 %vm630_vm1, %v500_v32 }
 0x180   : > { %1136 = vmatprep.subr.mxu1 %v1224_v56 }
 0x183   : > { %1137 = vmatpush3.xpose.msk.msra.mxu1 %vm630_vm1, %v495_v33 }
 0x184   : > { %1138 = vmatprep.subr.mxu1 %v1224_v56 }
 0x187   : > { %1139 = vmatpush3.xpose.msk.msra.mxu1 %vm630_vm1, %v490_v35 }
 0x188   : > { %1140 = vmatprep.subr.mxu1 %v1224_v56 }
 0x18b   : > { %1141 = vmatpush3.xpose.msk.msra.mxu1 %vm630_vm1, %v485_v37 }
 0x18c   : > { %1142 = vmatprep.subr.mxu1 %v1224_v56 }
 0x18f   : > { %1143 = vmatpush3.xpose.msk.msra.mxu1 %vm630_vm1, %v480_v38 }
 0x190   : > { %1144 = vmatprep.subr.mxu1 %v1224_v56 }
 0x193   : > { %1145 = vmatpush3.xpose.msk.msra.mxu1 %vm630_vm1, %v475_v40 }
 0x194   : > { %1146 = vmatprep.subr.mxu1 %v1224_v56 }
 0x19d   : > { %v306_v43 = vpop.permute.xlu0 %305 }
 0x19e   : > { %v470_v44 = vadd.f32 %v469_v13, %v306_v43 }
 0x1a0   : > { %1147 = vmatpush3.xpose.msk.msra.mxu1 %vm630_vm1, %v470_v44 }
 0x1a1   : > { %1148 = vmatprep.subr.mxu1 %v1224_v56 }
 0x1a4   : > { %1149 = vmatpush3.xpose.msk.msra.mxu1 %vm630_vm1, %v465_v46 }
 0x1a5   : > { %1150 = vmatprep.subr.mxu1 %v1224_v56 }
 0x1a8   : > { %1151 = vmatpush3.xpose.msk.msra.mxu1 %vm630_vm1, %v460_v47 }
 0x1a9   : > { %1152 = vmatprep.subr.mxu1 %v1224_v56 }
 0x1ac   : > { %1153 = vmatpush3.xpose.msk.msra.mxu1 %vm630_vm1, %v455_v49 }
 0x1ad   : > { %1154 = vmatprep.subr.mxu1 %v1224_v56 }
 0x1b0   : > { %1155 = vmatpush3.xpose.msk.msra.mxu1 %vm630_vm1, %v450_v51 }
 0x1b1   : > { %1156 = vmatprep.subr.mxu1 %v1224_v56 }
 0x1b4   : > { %1157 = vmatpush3.xpose.msk.msra.mxu1 %vm630_vm1, %v445_v52 }
 0x1b5   : > { %1158 = vmatprep.subr.mxu1 %v1224_v56 }
 0x1b7   : > { %v876_v2 = vpop.f32.mrf.mxu0 }
 0x1b8   : > { %1159 = vmatpush3.xpose.msk.msra.mxu1 %vm630_vm1, %v440_v54 }
 0x1b9   : > { %v1197_v3 = vpop.f32.mrf.mxu0 }
 0x232   : > { %v620_v60 = vpop.f32.mrf.mxu1 }
 0x233   : > { %v947_v61 = vmul.f32 -1.442695, %v620_v60 }
 0x234   : > { %v1127_v62 = vpop.f32.mrf.mxu1 }
 0x235   : > { %1211 = vpow2.f32 %v947_v61 }
 0x242   : > { %v1212_v63 = vpop.eup %1211 }
 0x243   : > { %v627_v0 = vadd.f32 1.0, %v1212_v63 }
 0x245   : > { %1213 = vrcp.f32 %v627_v0 }
 0x252   : > { %v1214_v1 = vpop.eup %1213 }
 0x253   : > { %1161 = vmatmul.mubr.msk.f32.vlgmr.msra.gmra.mxu1 %vm630_vm1, %v1214_v1 }
 0x313   : > { %v748_v4 = vpop.f32.mrf.mxu1 }
 0x314   : > { %v882_v5 = vmul.f32 %v881_v9, %v748_v4 }
 0x315   : > { %v1162_v56 = vpop.f32.mrf.mxu1 }
 0x316   : > { %v883_v6 = vadd.f32 %v882_v5, %v876_v2 }
 0x318   : > { %884 = vst [vmem:[%s196_s5] sm:$0xff] %v883_v6 }
 0x319 PF: > { %s15_s17 = sadd.s32 1, %s1221_s17  }
 0x31a   : > { %p12_p4 = scmp.ge.s32.totalorder %s15_s17, 4  }
 0x31c   :  { %14 = sbr.rel (!%p12_p4) target bundleno = 2 (0x2), region = 66 }

</bundles_post_ra>
